<compile_context>
chip_gen: v5e
topology: v5e:2x2
jax: 0.10.0
libtpu: 0.0.40
codegen_flags: <defaults>
</compile_context>

<pallas_src>
import jax
import jax.numpy as jnp
from jax.experimental import pallas as pl
from jax.experimental.pallas import tpu as pltpu


# ------------------------------ Pallas kernel -------------------------------


def _top_attention2_kernel(x0_ref, x1_ref, scal_ref, fc_ref, out_ref):
    """Fused TopAttention2 forward (eval mode).

    x0_ref : (B, C, S0) f32 VMEM  -- global stream, spatial flattened onto the lane axis
    x1_ref : (B, C, S1) f32 VMEM  -- local stream
    scal_ref: (2*C + 4,) f32 SMEM -- [w1_glo(C), b1_glo, w2_glo, w1_loc(C), b1_loc, w2_loc]
    fc_ref : (3, NC) f32 VMEM     -- rows 0..1: Linear weight (transposed), row 2: bias
    out_ref: (B, NC) f32 VMEM
    """
    C = x0_ref.shape[1]

    def spa(x_ref, off):
        x = x_ref[...]                                     # (B, C, S): single whole-block load
        # 1x1 Conv2d(C -> 1, bias=True): static channel unroll with SMEM scalar weights.
        acc = x[:, 0:1, :] * scal_ref[off + 0]
        for c in range(1, C):
            acc = acc + x[:, c:c + 1, :] * scal_ref[off + c]
        h = jnp.tanh(acc + scal_ref[off + C])              # (B, 1, S)
        # 1x1 Conv2d(1 -> 1, bias=False) is a scalar scale; the spatial softmax is fused into
        # the bmm pooling:  pooled = sum(h * e) / sum(e)  with  e = exp(w2*h - |w2|).
        # Shifting by |w2| (not the row max) is exact because |tanh| <= 1 bounds the logits to
        # [-|w2|, |w2|]; this drops the cross-lane max reduce. Safe while |w2| << 40 in f32.
        w2 = scal_ref[off + C + 1]
        e = jnp.exp(h * w2 - jnp.abs(w2))                  # (B, 1, S)
        num = jnp.sum(h * e, axis=-1)                      # (B, 1) attention-weighted pool
        den = jnp.sum(e, axis=-1)                          # (B, 1) softmax denominator
        # Exact reciprocal keeps 1e-4 parity with the f32 reference; flip to approx=True (EUP)
        # when downstream tolerance allows -- identical structure either way.
        return num * pl.reciprocal(den, approx=False)      # (B, 1) pooled feature

    f_glo = spa(x0_ref, 0)                                 # gloAttention on x[0]
    f_loc = spa(x1_ref, C + 2)                             # locAttention on x[1]

    # cat([x_glo, x_loc], dim=1) -> (B, 2); dropout (eval) = identity; Linear(2, NC).
    # K = 2, so two broadcast FMAs keep the output lane-dense (no tiny-K MXU pass).
    fc = fc_ref[...]                                       # (3, NC)
    out_ref[...] = f_glo * fc[0:1, :] + f_loc * fc[1:2, :] + fc[2:3, :]


# --------------------------------- wrapper -----------------------------------


@jax.jit
def top_attention2(x_glo, x_loc, scal, fc):
    B, C, H0, W0 = x_glo.shape
    _, _, H1, W1 = x_loc.shape
    NC = fc.shape[1]

    # Contiguous reshapes only (no transposes): no extra copy kernels / HBM traffic before the
    # fused Pallas call.  The flattened spatial axis lands on the 128-lane axis.
    x0 = x_glo.reshape(B, C, H0 * W0)                      # (B, C, S0)
    x1 = x_loc.reshape(B, C, H1 * W1)                      # (B, C, S1)

    # NOTE(v7x scaling): at larger B, switch to a grid over B with
    # dimension_semantics=("parallel",) + BlockSpec pipelining; at B=2 gridless is optimal.
    return pl.pallas_call(
        _top_attention2_kernel,
        out_shape=jax.ShapeDtypeStruct((B, NC), jnp.float32),
        in_specs=[
            pl.BlockSpec(memory_space=pltpu.MemorySpace.VMEM),   # x0 (whole-array resident)
            pl.BlockSpec(memory_space=pltpu.MemorySpace.VMEM),   # x1
            pl.BlockSpec(memory_space=pltpu.MemorySpace.SMEM),   # packed conv scalars
            pl.BlockSpec(memory_space=pltpu.MemorySpace.VMEM),   # packed fc (3, NC)
        ],
        out_specs=pl.BlockSpec(memory_space=pltpu.MemorySpace.VMEM),
    )(x0, x1, scal, fc)


# --------------------------- params & reference ------------------------------


def init_params(key, C, num_classes):
    """Deterministic synthetic parameters (PyTorch-style uniform init)."""
    ks = jax.random.split(key, 8)
    kc = 1.0 / jnp.sqrt(jnp.float32(C))                           # Conv2d(C,1,1) fan-in
    w1_glo = jax.random.uniform(ks[0], (C,), jnp.float32, -kc, kc)   # Conv2d weight[0,:,0,0]
    b1_glo = jax.random.uniform(ks[1], (), jnp.float32, -kc, kc)
    w2_glo = jax.random.uniform(ks[2], (), jnp.float32, -1.0, 1.0)   # Conv2d(1,1,1,bias=False)
    w1_loc = jax.random.uniform(ks[3], (C,), jnp.float32, -kc, kc)
    b1_loc = jax.random.uniform(ks[4], (), jnp.float32, -kc, kc)
    w2_loc = jax.random.uniform(ks[5], (), jnp.float32, -1.0, 1.0)
    kf = 1.0 / jnp.sqrt(jnp.float32(2))                           # Linear(in_features=2)
    wfc = jax.random.uniform(ks[6], (2, num_classes), jnp.float32, -kf, kf)  # Linear.weight.T
    bfc = jax.random.uniform(ks[7], (1, num_classes), jnp.float32, -kf, kf)  # Linear.bias
    return {"w1_glo": w1_glo, "b1_glo": b1_glo, "w2_glo": w2_glo,
            "w1_loc": w1_loc, "b1_loc": b1_loc, "w2_loc": w2_loc,
            "wfc": wfc, "bfc": bfc}


def pack_params(params):
    """One-time packing (outside the per-call path): SMEM scalar block + fused fc slab."""
    scal = jnp.concatenate([
        params["w1_glo"], jnp.stack([params["b1_glo"], params["w2_glo"]]),
        params["w1_loc"], jnp.stack([params["b1_loc"], params["w2_loc"]]),
    ]).astype(jnp.float32)                                        # (2*C + 4,)
    fc = jnp.concatenate([params["wfc"], params["bfc"]], axis=0).astype(jnp.float32)  # (3, NC)
    return scal, fc


def reference(x_glo, x_loc, params):
    """Pure-JAX reference reproducing the PyTorch forward (eval mode)."""
    def spa(x, w1, b1, w2):
        B = x.shape[0]
        h = jnp.tanh(jnp.einsum("bchw,c->bhw", x, w1) + b1)        # Conv2d(C,1,1)+bias, tanh
        logits = (w2 * h).reshape(B, -1)                           # Conv2d(1,1,1,bias=False)
        wmap = jax.nn.softmax(logits, axis=-1)                     # softmax over spatial
        out = jnp.sum(h.reshape(B, -1) * wmap, axis=-1, keepdims=True)  # bmm pooling -> (B, 1)
        return out, wmap

    f_glo, w = spa(x_glo, params["w1_glo"], params["b1_glo"], params["w2_glo"])
    # resize(w) in the original is invalid on a 2-D tensor and unused downstream -> skipped.
    f_loc, _ = spa(x_loc, params["w1_loc"], params["b1_loc"], params["w2_loc"])
    feats = jnp.concatenate([f_glo, f_loc], axis=1)                # (B, 2)
    # F.dropout at inference = identity.
    return feats @ params["wfc"] + params["bfc"][0]                # (B, NC)


# ----------------------------------- main ------------------------------------


if __name__ == "__main__":
    # in_channels=2 (so Linear(in_channels, num_classes) matches the (B, 2) concat),
    # batch=2, global stream 16x16, local stream 17x17 (the module's Upsample target).
    B, C, NC = 2, 2, 101
    key = jax.random.PRNGKey(0)
    pkey, k0, k1 = jax.random.split(key, 3)
    params = init_params(pkey, C, NC)
    scal, fc = pack_params(params)                                 # packed once, outside jit
    x_glo = jax.random.normal(k0, (B, C, 16, 16), jnp.float32)
    x_loc = jax.random.normal(k1, (B, C, 17, 17), jnp.float32)

    out = jax.block_until_ready(top_attention2(x_glo, x_loc, scal, fc))

    ref = reference(x_glo, x_loc, params)
    assert out.shape == (B, NC)
    assert jnp.allclose(out, ref, atol=1e-4, rtol=1e-4)
    print("KERNEL_OK")
</pallas_src>

<mosaic_0001>
module attributes {stable_mosaic.version = 11 : i64} {
  func.func @_top_attention2_kernel(%arg0: memref<2x2x256xf32, #tpu.memory_space<vmem>>, %arg1: memref<2x2x289xf32, #tpu.memory_space<vmem>>, %arg2: memref<8xf32, #tpu.memory_space<smem>>, %arg3: memref<3x101xf32, #tpu.memory_space<vmem>>, %arg4: memref<2x101xf32, #tpu.memory_space<vmem>>) attributes {dimension_semantics = [], scalar_prefetch = 0 : i64, scratch_operands = 0 : i64, tpu.core_type = #tpu.core_type<tc>} {
    %c0 = arith.constant 0 : index
    %c0_0 = arith.constant 0 : index
    %c0_1 = arith.constant 0 : index
    %0 = vector.load %arg0[%c0, %c0_0, %c0_1] : memref<2x2x256xf32, #tpu.memory_space<vmem>>, vector<2x2x256xf32>
    %1 = vector.extract_strided_slice %0 {offsets = [0, 0, 0], sizes = [2, 1, 256], strides = [1, 1, 1]} : vector<2x2x256xf32> to vector<2x1x256xf32>
    %c0_2 = arith.constant 0 : index
    %2 = memref.load %arg2[%c0_2] : memref<8xf32, #tpu.memory_space<smem>>
    %3 = vector.broadcast %2 : f32 to vector<2x1x256xf32>
    %4 = arith.mulf %1, %3 : vector<2x1x256xf32>
    %5 = vector.extract_strided_slice %0 {offsets = [0, 1, 0], sizes = [2, 1, 256], strides = [1, 1, 1]} : vector<2x2x256xf32> to vector<2x1x256xf32>
    %c1 = arith.constant 1 : index
    %6 = memref.load %arg2[%c1] : memref<8xf32, #tpu.memory_space<smem>>
    %7 = vector.broadcast %6 : f32 to vector<2x1x256xf32>
    %8 = arith.mulf %5, %7 : vector<2x1x256xf32>
    %9 = arith.addf %4, %8 : vector<2x1x256xf32>
    %c2 = arith.constant 2 : index
    %10 = memref.load %arg2[%c2] : memref<8xf32, #tpu.memory_space<smem>>
    %11 = vector.broadcast %10 : f32 to vector<2x1x256xf32>
    %12 = arith.addf %9, %11 : vector<2x1x256xf32>
    %13 = math.tanh %12 : vector<2x1x256xf32>
    %c3 = arith.constant 3 : index
    %14 = memref.load %arg2[%c3] : memref<8xf32, #tpu.memory_space<smem>>
    %15 = vector.broadcast %14 : f32 to vector<2x1x256xf32>
    %16 = arith.mulf %13, %15 : vector<2x1x256xf32>
    %17 = math.absf %14 : f32
    %18 = vector.broadcast %17 : f32 to vector<2x1x256xf32>
    %19 = arith.subf %16, %18 : vector<2x1x256xf32>
    %20 = math.exp %19 : vector<2x1x256xf32>
    %21 = arith.mulf %13, %20 : vector<2x1x256xf32>
    %cst = arith.constant dense<0.000000e+00> : vector<2x1xf32>
    %22 = vector.multi_reduction <add>, %21, %cst [2] : vector<2x1x256xf32> to vector<2x1xf32>
    %cst_3 = arith.constant dense<0.000000e+00> : vector<2x1xf32>
    %23 = vector.multi_reduction <add>, %20, %cst_3 [2] : vector<2x1x256xf32> to vector<2x1xf32>
    %24 = tpu.reciprocal %23 : vector<2x1xf32> -> vector<2x1xf32>
    %25 = arith.mulf %22, %24 : vector<2x1xf32>
    %c0_4 = arith.constant 0 : index
    %c0_5 = arith.constant 0 : index
    %c0_6 = arith.constant 0 : index
    %26 = vector.load %arg1[%c0_4, %c0_5, %c0_6] : memref<2x2x289xf32, #tpu.memory_space<vmem>>, vector<2x2x289xf32>
    %27 = vector.extract_strided_slice %26 {offsets = [0, 0, 0], sizes = [2, 1, 289], strides = [1, 1, 1]} : vector<2x2x289xf32> to vector<2x1x289xf32>
    %c4 = arith.constant 4 : index
    %28 = memref.load %arg2[%c4] : memref<8xf32, #tpu.memory_space<smem>>
    %29 = vector.broadcast %28 : f32 to vector<2x1x289xf32>
    %30 = arith.mulf %27, %29 : vector<2x1x289xf32>
    %31 = vector.extract_strided_slice %26 {offsets = [0, 1, 0], sizes = [2, 1, 289], strides = [1, 1, 1]} : vector<2x2x289xf32> to vector<2x1x289xf32>
    %c5 = arith.constant 5 : index
    %32 = memref.load %arg2[%c5] : memref<8xf32, #tpu.memory_space<smem>>
    %33 = vector.broadcast %32 : f32 to vector<2x1x289xf32>
    %34 = arith.mulf %31, %33 : vector<2x1x289xf32>
    %35 = arith.addf %30, %34 : vector<2x1x289xf32>
    %c6 = arith.constant 6 : index
    %36 = memref.load %arg2[%c6] : memref<8xf32, #tpu.memory_space<smem>>
    %37 = vector.broadcast %36 : f32 to vector<2x1x289xf32>
    %38 = arith.addf %35, %37 : vector<2x1x289xf32>
    %39 = math.tanh %38 : vector<2x1x289xf32>
    %c7 = arith.constant 7 : index
    %40 = memref.load %arg2[%c7] : memref<8xf32, #tpu.memory_space<smem>>
    %41 = vector.broadcast %40 : f32 to vector<2x1x289xf32>
    %42 = arith.mulf %39, %41 : vector<2x1x289xf32>
    %43 = math.absf %40 : f32
    %44 = vector.broadcast %43 : f32 to vector<2x1x289xf32>
    %45 = arith.subf %42, %44 : vector<2x1x289xf32>
    %46 = math.exp %45 : vector<2x1x289xf32>
    %47 = arith.mulf %39, %46 : vector<2x1x289xf32>
    %cst_7 = arith.constant dense<0.000000e+00> : vector<2x1xf32>
    %48 = vector.multi_reduction <add>, %47, %cst_7 [2] : vector<2x1x289xf32> to vector<2x1xf32>
    %cst_8 = arith.constant dense<0.000000e+00> : vector<2x1xf32>
    %49 = vector.multi_reduction <add>, %46, %cst_8 [2] : vector<2x1x289xf32> to vector<2x1xf32>
    %50 = tpu.reciprocal %49 : vector<2x1xf32> -> vector<2x1xf32>
    %51 = arith.mulf %48, %50 : vector<2x1xf32>
    %c0_9 = arith.constant 0 : index
    %c0_10 = arith.constant 0 : index
    %52 = vector.load %arg3[%c0_9, %c0_10] : memref<3x101xf32, #tpu.memory_space<vmem>>, vector<3x101xf32>
    %53 = vector.extract_strided_slice %52 {offsets = [0, 0], sizes = [1, 101], strides = [1, 1]} : vector<3x101xf32> to vector<1x101xf32>
    %54 = vector.broadcast %25 : vector<2x1xf32> to vector<2x101xf32>
    %55 = vector.broadcast %53 : vector<1x101xf32> to vector<2x101xf32>
    %56 = arith.mulf %54, %55 : vector<2x101xf32>
    %57 = vector.extract_strided_slice %52 {offsets = [1, 0], sizes = [1, 101], strides = [1, 1]} : vector<3x101xf32> to vector<1x101xf32>
    %58 = vector.broadcast %51 : vector<2x1xf32> to vector<2x101xf32>
    %59 = vector.broadcast %57 : vector<1x101xf32> to vector<2x101xf32>
    %60 = arith.mulf %58, %59 : vector<2x101xf32>
    %61 = arith.addf %56, %60 : vector<2x101xf32>
    %62 = vector.extract_strided_slice %52 {offsets = [2, 0], sizes = [1, 101], strides = [1, 1]} : vector<3x101xf32> to vector<1x101xf32>
    %63 = vector.broadcast %62 : vector<1x101xf32> to vector<2x101xf32>
    %64 = arith.addf %61, %63 : vector<2x101xf32>
    %c0_11 = arith.constant 0 : index
    %c0_12 = arith.constant 0 : index
    %65 = vector.load %arg4[%c0_11, %c0_12] : memref<2x101xf32, #tpu.memory_space<vmem>>, vector<2x101xf32>
    tpu.vector_store %arg4[%c0_11, %c0_12], %64 {strides = array<i32>} : memref<2x101xf32, #tpu.memory_space<vmem>>, vector<2x101xf32>,
    return
  }
}

</mosaic_0001>

<bundles_post_ra>
// kernel: top_attention2.1
= control target key start
LH: loop header
LB: loop body
LE: loop exit
PB: predicated region body
PF: predicated region fallthrough
CT: control target
= control target key end

     0   :  { %9 = vsyncpa [#allocation4], 0  ;;  %s1433_s0 = inlined_call_operand.vmem [shape: f32[2,2,256], index: 0, kind: input, shape index: {}]   ;;  %s1434_s1 = inlined_call_operand.vmem [shape: f32[2,2,289], index: 1, kind: input, shape index: {}]   ;;  %s1435_s2 = inlined_call_operand.vmem [shape: f32[8], index: 2, kind: input, shape index: {}]   ;;  %s1436_s3 = inlined_call_operand.vmem [shape: f32[3,101], index: 3, kind: input, shape index: {}]   ;;  %s1437_s4 = inlined_call_operand.hbm [shape: f32[2,101], index: 4, kind: output, shape index: {}]  }
   0x1   :  { %10 = vsyncpa [#allocation3], 0  ;;  %s20_s17 = sshll.u32 %s1435_s2, 4  ;;  %s979_s18 = smov [#allocation2]   ;;  %s21_s17 = int_to_ptr.vmem [resolvable:$true] %s20_s17 }
   0x2   :  { %23 = dma.vmem_to_smem %s21_s17, 16, %s979_s18, [#allocation4]  }
   0x3   :  { %975 = dma.done.wait [#allocation4], 16  }
   0x4   :  { %976 = vsyncadd [#allocation4], 4294967280 }
   0x5   :  { %30 = sfence }
   0x6   :  { %v274_v0 = vlaneseq  ;;  %s33_s19 = sld [smem:[#allocation2]]  ;;  %v1017_v2 = vld [vmem:[%s1436_s3] sm:$0x7]  ;;  %v32_v4 = vld [vmem:[%s1433_s0 + $0x4] sm:$0xf]  ;;  %vm81_vm0 = vcmask 1040384  }
   0x7   :  { %s859_s20 = sld [smem:[#allocation2 + $0x1]]  ;;  %v31_v3 = vld [vmem:[%s1433_s0] sm:$0xf]  ;;  %v1028_v6 = vperm.slane %v1017_v2, 0  ;;  %v143_v16 = vld [vmem:[%s1434_s1 + $0x6] sm:$0x3f] }
   0x8   :  { %v1011_v1 = vshrl.u32 %v274_v0, 7  ;;  %s862_s21 = sld [smem:[#allocation2 + $0x2]]  ;;  %v142_v12 = vld [vmem:[%s1434_s1] sm:$0x3f]  ;;  %vm199_vm1 = vcmask 262144   ;;  %s981_s9 = smov [#allocation5]  }
   0x9   :  { %s1019_s2 = sld [smem:[#allocation2 + $0x4]]  ;;  %s847_s10 = sshll.u32 %s981_s9, 4  ;;  %s848_s10 = int_to_ptr.vmem [resolvable:$true] %s847_s10 }
   0xa   :  { %873 = vset.pattern.permute.xlu2 %v1011_v1  ;;  %s865_s28 = sld [smem:[#allocation2 + $0x5]]  ;;  %v1046_v30 = vadd.s32 24, %v1011_v1  ;;  %v1054_v48 = vadd.s32 16, %v1011_v1  ;;  %v1059_v62 = vadd.s32 8, %v1011_v1  ;;  %s849_s13 = sshll.u32 %s1437_s4, 4  ;;  %s850_s13 = int_to_ptr.hbm [resolvable:$true] %s849_s13 }
   0xb   :  { %s1030_s29 = sld [smem:[#allocation2 + $0x6]] }
   0xc   :  { %v34_v5 = vstv %s33_s19  ;;  %s1039_s6 = sld [smem:[#allocation2 + $0x3]]  ;;  %875 = vset.pattern.permute.xlu1 %v1054_v48  ;;  %874 = vset.pattern.permute.xlu0 %v1059_v62 }
   0xd   :  { %v38_v7 = vstv %s859_s20  ;;  %v35_v8 = vmul.f32 %v34_v5, %v31_v3  ;;  %v36_v10 = vmul.f32 %v34_v5, %v32_v4  ;;  %s1043_s7 = sld [smem:[#allocation2 + $0x7]] }
   0xe   :  { %v39_v9 = vmul.f32 %v38_v7, %v31_v3  ;;  %v40_v11 = vmul.f32 %v38_v7, %v32_v4  ;;  %v52_v17 = vstv %s862_s21 }
   0xf   :  { %v145_v15 = vstv %s1019_s2 }
  0x10   :  { %v860_v13 = vrot.slane %v39_v9, 9  ;;  %v861_v14 = vrot.slane %v40_v11, 9  ;;  %v149_v18 = vstv %s865_s28  ;;  %v146_v21 = vmul.f32 %v145_v15, %v142_v12 }
  0x11   :  { %v150_v22 = vmul.f32 %v149_v18, %v142_v12  ;;  %v151_v23 = vmul.f32 %v149_v18, %v143_v16  ;;  %v163_v27 = vstv %s1030_s29  ;;  %v147_v28 = vmul.f32 %v145_v15, %v143_v16 }
  0x12   :  { %278 = vperm.xlu2 %873, %v1028_v6   ;;  %v49_v19 = vadd.f32 %v860_v13, %v35_v8  ;;  %v50_v20 = vadd.f32 %v861_v14, %v36_v10  ;;  %s61_s1 = sand.u32 2147483647, %s1039_s6  ;;  %v58_v34 = vstv %s1039_s6 }
  0x13   :  { %v866_v26 = vrot.slane %v150_v22, 9  ;;  %v867_v29 = vrot.slane %v151_v23, 9  ;;  %v62_v36 = vstv %s61_s1  ;;  %s172_s8 = sand.u32 2147483647, %s1043_s7  ;;  %v169_v41 = vstv %s1043_s7 }
  0x14   :  { %v53_v24 = vadd.f32 %v52_v17, %v49_v19  ;;  %v54_v25 = vadd.f32 %v52_v17, %v50_v20  ;;  %v173_v45 = vstv %s172_s8 }
  0x15   :  { %v160_v31 = vadd.f32 %v866_v26, %v146_v21  ;;  %v161_v33 = vadd.f32 %v867_v29, %v147_v28 }
  0x16   :  { %915 = vtanh.f32 %v53_v24 }
  0x17   :  { %917 = vtanh.f32 %v54_v25  ;;  %v164_v32 = vadd.f32 %v163_v27, %v160_v31  ;;  %v165_v39 = vadd.f32 %v163_v27, %v161_v33 }
  0x19   :  { %919 = vtanh.f32 %v164_v32 }
  0x1a   :  { %876 = vset.pattern.permute.xlu2 %v1046_v30  ;;  %921 = vtanh.f32 %v165_v39 }
  0x1c   :  { %v916_v35 = vpop.eup %915 }
  0x1d   :  { %v918_v37 = vpop.eup %917  ;;  %v59_v38 = vmul.f32 %v916_v35, %v58_v34 }
  0x1e   :  { %v60_v40 = vmul.f32 %v918_v37, %v58_v34 }
  0x1f   :  { %v63_v42 = vsub.f32 %v59_v38, %v62_v36  ;;  %v920_v43 = vpop.eup %919 }
  0x20   :  { %v64_v44 = vsub.f32 %v60_v40, %v62_v36  ;;  %v170_v47 = vmul.f32 %v920_v43, %v169_v41  ;;  %v922_v52 = vpop.eup %921 }
  0x21   :  { %v65_v46 = vmul.f32 1.442695, %v63_v42  ;;  %v171_v58 = vmul.f32 %v922_v52, %v169_v41 }
  0x22   :  { %296 = vperm.xlu2 %876, %v1028_v6   ;;  %v67_v49 = vmul.f32 1.442695, %v64_v44  ;;  %v174_v50 = vsub.f32 %v170_v47, %v173_v45 }
  0x23   :  { %923 = vpow2.f32 %v65_v46  ;;  %v175_v14 = vsub.f32 %v171_v58, %v173_v45 }
  0x24   :  { %925 = vpow2.f32 %v67_v49  ;;  %v176_v51 = vmul.f32 1.442695, %v174_v50 }
  0x25   :  { %v178_v22 = vmul.f32 1.442695, %v175_v14 }
  0x26   :  { %927 = vpow2.f32 %v176_v51 }
  0x27   :  { %929 = vpow2.f32 %v178_v22 }
  0x29   :  { %v924_v53 = vpop.eup %923 }
  0x2a   :  { %v926_v54 = vpop.eup %925  ;;  %v94_v55 = vperm.slane %v924_v53, 0  ;;  %v95_v56 = vperm.slane %v924_v53, 2  ;;  %v69_v57 = vmul.f32 %v924_v53, %v916_v35  ;;  %v1074_v35 = vadd.s32 32, %v1011_v1 }
  0x2b   :  { %v96_v59 = vperm.slane %v926_v54, 0  ;;  %v97_v60 = vperm.slane %v926_v54, 2  ;;  %v70_v61 = vmul.f32 %v926_v54, %v918_v37  ;;  %v1089_v53 = vadd.s32 40, %v1011_v1 }
  0x2c   :  { %v102_v63 = vsel %vm81_vm0, %v94_v55, 0.0  ;;  %v103_v3 = vsel %vm81_vm0, %v95_v56, 0.0  ;;  %v73_v4 = vperm.slane %v69_v57, 0  ;;  %v74_v5 = vperm.slane %v69_v57, 2  ;;  %v928_v12 = vpop.eup %927  ;;  %877 = vset.pattern.permute.xlu2 %v1074_v35 }
  0x2d   :  { %v104_v7 = vadd.f32 %v103_v3, %v102_v63  ;;  %v75_v10 = vperm.slane %v70_v61, 0  ;;  %v76_v11 = vperm.slane %v70_v61, 2  ;;  %v107_v15 = vsel %vm81_vm0, %v96_v59, 0.0  ;;  %v930_v33 = vpop.eup %929 }
  0x2e   :  { %v82_v8 = vsel %vm81_vm0, %v73_v4, 0.0  ;;  %v83_v9 = vsel %vm81_vm0, %v74_v5, 0.0  ;;  %v108_v16 = vsel %vm81_vm0, %v97_v60, 0.0  ;;  %v213_v19 = vperm.slane %v928_v12, 0 }
  0x2f   :  { %105 = vadd.xlane.f32.xlu1 %v104_v7  ;;  %v84_v13 = vadd.f32 %v83_v9, %v82_v8  ;;  %v87_v17 = vsel %vm81_vm0, %v75_v10, 0.0  ;;  %v88_v18 = vsel %vm81_vm0, %v76_v11, 0.0  ;;  %v214_v20 = vperm.slane %v928_v12, 2 }
  0x30   :  { %v109_v21 = vadd.f32 %v108_v16, %v107_v15  ;;  %v89_v23 = vadd.f32 %v88_v18, %v87_v17  ;;  %v215_v24 = vperm.slane %v928_v12, 4  ;;  %v225_v25 = vsel %vm81_vm0, %v213_v19, 0.0 }
  0x31   :  { %85 = vadd.xlane.f32.xlu0 %v84_v13  ;;  %v226_v26 = vsel %vm81_vm0, %v214_v20, 0.0  ;;  %v180_v27 = vmul.f32 %v928_v12, %v920_v43  ;;  %v181_v39 = vmul.f32 %v930_v33, %v922_v52  ;;  %v1086_v52 = vadd.s32 64, %v1011_v1 }
  0x32   :  { %v227_v28 = vadd.f32 %v226_v26, %v225_v25  ;;  %v228_v29 = vsel %vm199_vm1, %v215_v24, 0.0  ;;  %v216_v54 = vperm.slane %v930_v33, 0  ;;  %v217_v55 = vperm.slane %v930_v33, 2 }
  0x33   :  { %v184_v31 = vperm.slane %v180_v27, 0  ;;  %v185_v32 = vperm.slane %v180_v27, 2  ;;  %v186_v36 = vperm.slane %v180_v27, 4  ;;  %v187_v42 = vperm.slane %v181_v39, 0 }
  0x34   :  { %v229_v34 = vadd.f32 %v228_v29, %v227_v28  ;;  %v188_v43 = vperm.slane %v181_v39, 2  ;;  %v189_v45 = vperm.slane %v181_v39, 4  ;;  %v1097_v56 = vadd.s32 48, %v1011_v1 }
  0x35   :  { %v196_v37 = vsel %vm81_vm0, %v184_v31, 0.0  ;;  %v197_v38 = vsel %vm81_vm0, %v185_v32, 0.0  ;;  %v200_v41 = vsel %vm199_vm1, %v186_v36, 0.0  ;;  %v204_v46 = vsel %vm81_vm0, %v187_v42, 0.0 }
  0x36   :  { %v198_v40 = vadd.f32 %v197_v38, %v196_v37  ;;  %v205_v47 = vsel %vm81_vm0, %v188_v43, 0.0  ;;  %v207_v50 = vsel %vm199_vm1, %v189_v45, 0.0  ;;  %v218_v57 = vperm.slane %v930_v33, 4 }
  0x37   :  { %110 = vadd.xlane.f32.xlu1 %v109_v21  ;;  %v206_v49 = vadd.f32 %v205_v47, %v204_v46  ;;  %v232_v58 = vsel %vm81_vm0, %v216_v54, 0.0  ;;  %v233_v59 = vsel %vm81_vm0, %v217_v55, 0.0  ;;  %v1102_v60 = vperm.slane %v1017_v2, 1 }
  0x38   :  { %v201_v44 = vadd.f32 %v200_v41, %v198_v40  ;;  %v234_v61 = vadd.f32 %v233_v59, %v232_v58  ;;  %v235_v63 = vsel %vm199_vm1, %v218_v57, 0.0  ;;  %v1110_v4 = vadd.s32 72, %v1011_v1 }
  0x39   :  { %90 = vadd.xlane.f32.xlu0 %v89_v23  ;;  %v208_v51 = vadd.f32 %v207_v50, %v206_v49  ;;  %v1115_v5 = vadd.s32 80, %v1011_v1  ;;  %v1120_v7 = vadd.s32 88, %v1011_v1  ;;  %v318_v8 = vadd.s32 56, %v1011_v1 }
  0x3a   :  { %v236_v3 = vadd.f32 %v235_v63, %v234_v61  ;;  %v1139_v18 = vperm.slane %v1017_v2, 2  ;;  %v1142_v19 = vadd.s32 96, %v1011_v1 }
  0x41   :  { %230 = vadd.xlane.f32.xlu0 %v229_v34 }
  0x4b   :  { %202 = vadd.xlane.f32.xlu2 %v201_v44 }
  0x50   :  { %290 = vperm.xlu1 %875, %v1028_v6  }
  0x53   :  { %209 = vadd.xlane.f32.xlu2 %v208_v51 }
  0x55   :  { %284 = vperm.xlu0 %874, %v1028_v6  }
  0x58   :  { %878 = vset.pattern.permute.xlu1 %v1089_v53 }
  0x5d   :  { %881 = vset.pattern.permute.xlu0 %v1086_v52 }
  0x65   :  { %326 = vperm.xlu0 %881, %v1028_v6  }
  0x6b   :  { %302 = vperm.xlu2 %877, %v1028_v6  }
  0x6c   :  { %v1145_v23 = vpop.permute.xlu2 %278 }
  0x6d   :  { %886 = vset.pattern.permute.xlu0 %v1011_v1 }
  0x73   :  { %879 = vset.pattern.permute.xlu2 %v1097_v56 }
  0x75   :  { %399 = vperm.xlu0 %886, %v1102_v60  }
  0x7a   :  { %237 = vadd.xlane.f32.xlu1 %v236_v3 }
  0x7b   :  { %314 = vperm.xlu2 %879, %v1028_v6  }
  0x7c   :  { %v1153_v26 = vpop.permute.xlu2 %296 }
  0x7d   :  { %891 = vset.pattern.permute.xlu0 %v1089_v53 }
  0x83   :  { %882 = vset.pattern.permute.xlu2 %v1110_v4 }
  0x85   :  { %429 = vperm.xlu0 %891, %v1102_v60  }
  0x8b   :  { %332 = vperm.xlu2 %882, %v1028_v6  }
  0x8d   :  { %896 = vset.pattern.permute.xlu0 %v1115_v5 }
  0x93   :  { %308 = vperm.xlu1 %878, %v1028_v6   ;;  %884 = vset.pattern.permute.xlu2 %v1120_v7 }
  0x95   :  { %459 = vperm.xlu0 %896, %v1102_v60  }
  0x9b   :  { %880 = vset.pattern.permute.xlu1 %v318_v8  ;;  %344 = vperm.xlu2 %884, %v1028_v6  }
  0x9d   :  { %901 = vset.pattern.permute.xlu0 %v1054_v48 }
  0xa2   :  { %v1128_v9 = vpop.xlane.xlu1 %105 }
  0xa3   :  { %320 = vperm.xlu1 %880, %v1028_v6   ;;  %887 = vset.pattern.permute.xlu2 %v1059_v62  ;;  %vm117_vm10 = vweird.f32 %v1128_v9  ;;  %v123_v57 = vand.u32 2147483648, %v1128_v9 }
  0xa4   :  { %v1134_v12 = vpop.xlane.xlu0 %85 }
  0xa5   :  { %556 = vperm.xlu0 %901, %v1139_v18  }
  0xaa   :  { %v111_v10 = vpop.xlane.xlu1 %110 }
  0xab   :  { %931 = vrcp.f32 %v111_v10  ;;  %883 = vset.pattern.permute.xlu1 %v1115_v5  ;;  %405 = vperm.xlu2 %887, %v1102_v60   ;;  %v137_v15 = vand.u32 2147483648, %v111_v10  ;;  %v135_v17 = vand.u32 2147483647, %v111_v10  ;;  %vm131_vm3 = vweird.f32 %v111_v10 }
  0xac   :  { %v91_v25 = vpop.xlane.xlu0 %90 }
  0xad   :  { %v138_v21 = vor.u32 1.1754944e-38, %v137_v15  ;;  %vm136_vm5 = vcmp.eq.f32.partialorder %v135_v17, 8.507059e+37  ;;  %906 = vset.pattern.permute.xlu0 %v318_v8 }
  0xb1   :  { %v932_v11 = vpop.eup %931 }
  0xb2   :  { %v127_v13 = vmul.f32 %v932_v11, %v111_v10  ;;  %vm132_vm2 = vweird.f32 %v932_v11 }
  0xb3   :  { %338 = vperm.xlu1 %883, %v1028_v6   ;;  %889 = vset.pattern.permute.xlu2 %v1046_v30  ;;  %vm133_vm4 = vmor %vm131_vm3, %vm132_vm2  ;;  %vm766_vm2 = vcmask 130112   ;;  %vm770_vm3 = vcmask 195712  }
  0xb4   :  { %v128_v14 = vsub.f32 1.0, %v127_v13  ;;  %v231_v28 = vpop.xlane.xlu0 %230 }
  0xb5   :  { %586 = vperm.xlu0 %906, %v1139_v18   ;;  %933 = vrcp.f32 %v231_v28  ;;  %vm244_vm6 = vweird.f32 %v231_v28  ;;  %v250_v45 = vand.u32 2147483648, %v231_v28  ;;  %v248_v50 = vand.u32 2147483647, %v231_v28 }
  0xb6   :  { %v129_v16 = vmul.f32 %v932_v11, %v128_v14  ;;  %935 = vrcp.f32 %v1128_v9 }
  0xb7   :  { %v251_v59 = vor.u32 1.1754944e-38, %v250_v45  ;;  %vm249_vm13 = vcmp.eq.f32.partialorder %v248_v50, 8.507059e+37 }
  0xb8   :  { %v130_v20 = vadd.f32 %v932_v11, %v129_v16 }
  0xba   :  { %v134_v22 = vsel %vm133_vm4, %v932_v11, %v130_v20  ;;  %vm774_vm4 = vcmask 261312  }
  0xbb   :  { %v139_v24 = vsel %vm136_vm5, %v138_v21, %v134_v22  ;;  %885 = vset.pattern.permute.xlu1 %v1142_v19  ;;  %417 = vperm.xlu2 %889, %v1102_v60   ;;  %v934_v31 = vpop.eup %933  ;;  %vm778_vm5 = vcmask 326912  }
  0xbc   :  { %v1149_v2 = vmul.f32 %v139_v24, %v91_v25  ;;  %v936_v32 = vpop.eup %935  ;;  %v240_v33 = vmul.f32 %v934_v31, %v231_v28  ;;  %vm245_vm7 = vweird.f32 %v934_v31 }
  0xbd   :  { %911 = vset.pattern.permute.xlu0 %v1142_v19  ;;  %v113_v34 = vmul.f32 %v936_v32, %v1128_v9  ;;  %vm118_vm8 = vweird.f32 %v936_v32  ;;  %vm1187_vm9 = vmor %vm244_vm6, %vm245_vm7  ;;  %vm782_vm6 = vcmask 392512   ;;  %vm786_vm7 = vcmask 458112  }
  0xbe   :  { %v1158_v27 = vpop.xlane.xlu2 %202  ;;  %v241_v39 = vsub.f32 1.0, %v240_v33  ;;  %vm1194_vm12 = vmor %vm117_vm10, %vm118_vm8  ;;  %v1209_v22 = vperm.slane %v1149_v2, 0  ;;  %vm790_vm8 = vcmask 523712   ;;  %vm798_vm10 = vcmask 654912  }
  0xbf   :  { %v114_v40 = vsub.f32 1.0, %v113_v34 }
  0xc0   :  { %v242_v41 = vmul.f32 %v934_v31, %v241_v39 }
  0xc1   :  { %v115_v42 = vmul.f32 %v936_v32, %v114_v40 }
  0xc2   :  { %v1173_v29 = vpop.permute.xlu1 %290  ;;  %v243_v49 = vadd.f32 %v934_v31, %v242_v41 }
  0xc3   :  { %350 = vperm.xlu1 %885, %v1028_v6   ;;  %892 = vset.pattern.permute.xlu2 %v1097_v56  ;;  %v116_v51 = vadd.f32 %v936_v32, %v115_v42 }
  0xc5   :  { %616 = vperm.xlu0 %911, %v1139_v18   ;;  %v120_v10 = vsel %vm1194_vm12, %v936_v32, %v116_v51  ;;  %v378_v32 = vmul.f32 %v1145_v23, %v1209_v22  ;;  %vm806_vm12 = vcmask 786112  }
  0xc6   :  { %v1164_v6 = vpop.xlane.xlu2 %209 }
  0xc7   :  { %v1177_v36 = vpop.permute.xlu0 %284 }
  0xcb   :  { %888 = vset.pattern.permute.xlu1 %v1054_v48  ;;  %435 = vperm.xlu2 %892, %v1102_v60  }
  0xce   :  { %v1169_v48 = vpop.permute.xlu2 %302 }
  0xd3   :  { %411 = vperm.xlu1 %888, %v1102_v60   ;;  %894 = vset.pattern.permute.xlu2 %v1086_v52 }
  0xd6   :  { %v1179_v37 = vpop.permute.xlu2 %314 }
  0xd7   :  { %v1183_v44 = vpop.permute.xlu0 %326 }
  0xdb   :  { %890 = vset.pattern.permute.xlu1 %v1074_v35  ;;  %447 = vperm.xlu2 %894, %v1102_v60  }
  0xe3   :  { %423 = vperm.xlu1 %890, %v1102_v60   ;;  %897 = vset.pattern.permute.xlu2 %v1120_v7 }
  0xe5   :  { %v1185_v46 = vpop.permute.xlu2 %332 }
  0xe7   :  { %v1204_v13 = vpop.permute.xlu0 %399 }
  0xeb   :  { %893 = vset.pattern.permute.xlu1 %v318_v8  ;;  %465 = vperm.xlu2 %897, %v1102_v60   ;;  %v247_v8 = vsel %vm1187_vm9, %v934_v31, %v243_v49  ;;  %vm794_vm9 = vcmask 589312  }
  0xec   :  { %v252_v15 = vsel %vm249_vm13, %v251_v59, %v247_v8  ;;  %vm810_vm13 = vcmask 851712  }
  0xed   :  { %v238_v38 = vpop.xlane.xlu1 %237  ;;  %v267_v25 = vmul.f32 %v252_v15, %v1158_v27 }
  0xee   :  { %937 = vrcp.f32 %v238_v38  ;;  %v264_v58 = vand.u32 2147483648, %v238_v38  ;;  %v262_v63 = vand.u32 2147483647, %v238_v38  ;;  %vm258_vm14 = vweird.f32 %v238_v38 }
  0xef   :  { %v1222_v2 = vperm.slane %v267_v25, 0 }
  0xf0   :  { %v265_v14 = vor.u32 1.1754944e-38, %v264_v58  ;;  %vm263_vm1 = vcmp.eq.f32.partialorder %v262_v63, 8.507059e+37 }
  0xf3   :  { %441 = vperm.xlu1 %893, %v1102_v60   ;;  %899 = vset.pattern.permute.xlu2 %v1011_v1  ;;  %v121_v1 = vand.u32 2147483647, %v1128_v9  ;;  %v124_v9 = vor.u32 1.1754944e-38, %v123_v57 }
  0xf4   :  { %v938_v43 = vpop.eup %937 }
  0xf5   :  { %v254_v47 = vmul.f32 %v938_v43, %v238_v38  ;;  %vm259_vm11 = vweird.f32 %v938_v43  ;;  %vm122_vm0 = vcmp.eq.f32.partialorder %v121_v1, 8.507059e+37  ;;  %v1206_v17 = vpop.permute.xlu2 %344 }
  0xf6   :  { %vm260_vm15 = vmor %vm258_vm14, %vm259_vm11  ;;  %v125_v20 = vsel %vm122_vm0, %v124_v9, %v120_v10  ;;  %v386_v9 = vmul.f32 %v1183_v44, %v1209_v22  ;;  %vm802_vm11 = vcmask 720512   ;;  %vm837_vm14 = vcmask 1041409  }
  0xf7   :  { %v255_v55 = vsub.f32 1.0, %v254_v47  ;;  %v140_v28 = vmul.f32 %v125_v20, %v1134_v12  ;;  %v1224_v34 = vpop.permute.xlu0 %429  ;;  %v980_v20 = vmov 0  }
  0xf8   :  { %914 = vset.pattern.permute.xlu0 %v980_v20 }
  0xf9   :  { %v256_v61 = vmul.f32 %v938_v43, %v255_v55  ;;  %v381_v55 = vmul.f32 %v1153_v26, %v1209_v22 }
  0xfb   :  { %v257_v11 = vadd.f32 %v938_v43, %v256_v61  ;;  %895 = vset.pattern.permute.xlu1 %v1110_v4  ;;  %544 = vperm.xlu2 %899, %v1139_v18  }
  0xfd   :  { %v261_v16 = vsel %vm260_vm15, %v938_v43, %v257_v11  ;;  %v379_v43 = vmul.f32 %v1177_v36, %v1209_v22  ;;  %vm840_vm15 = vcmask 820224  }
  0xfe   :  { %v266_v21 = vsel %vm263_vm1, %v265_v14, %v261_v16 }
  0xff   :  { %v268_v24 = vmul.f32 %v266_v21, %v1164_v6  ;;  %v1226_v6 = vperm.slane %v140_v28, 0  ;;  %v389_v28 = vmul.f32 %v1206_v17, %v1209_v22 }
 0x101   :  { %v1214_v31 = vperm.slane %v268_v24, 0  ;;  %v366_v42 = vmul.f32 %v1177_v36, %v1226_v6  ;;  %v368_v51 = vmul.f32 %v1153_v26, %v1226_v6  ;;  %v371_v57 = vmul.f32 %v1179_v37, %v1226_v6 }
 0x102   :  { %v384_v26 = vmul.f32 %v1179_v37, %v1209_v22  ;;  %v373_v11 = vmul.f32 %v1183_v44, %v1226_v6  ;;  %v380_v44 = vmul.f32 %v1173_v29, %v1209_v22  ;;  %v376_v21 = vmul.f32 %v1206_v17, %v1226_v6 }
 0x103   :  { %453 = vperm.xlu1 %895, %v1102_v60   ;;  %902 = vset.pattern.permute.xlu2 %v1046_v30  ;;  %v499_v33 = vmul.f32 %v1204_v13, %v1214_v31  ;;  %v504_v30 = vmul.f32 %v1224_v34, %v1214_v31  ;;  %v365_v17 = vmul.f32 %v1145_v23, %v1226_v6 }
 0x105   :  { %v1228_v27 = vpop.permute.xlu1 %308  ;;  %v406_v12 = vpop.permute.xlu2 %405  ;;  %v1230_v38 = vadd.f32 %v499_v33, %v378_v32 }
 0x106   :  { %v383_v39 = vmul.f32 %v1228_v27, %v1209_v22  ;;  %v487_v40 = vmul.f32 %v406_v12, %v1222_v2  ;;  %v500_v41 = vmul.f32 %v406_v12, %v1214_v31 }
 0x108   :  { %v1242_v45 = vadd.f32 %v504_v30, %v383_v39  ;;  %v1244_v47 = vadd.f32 %v487_v40, %v366_v42  ;;  %v1246_v49 = vadd.f32 %v500_v41, %v379_v43  ;;  %v486_v42 = vmul.f32 %v1204_v13, %v1222_v2 }
 0x109   :  { %v367_v13 = vmul.f32 %v1173_v29, %v1226_v6 }
 0x10a   :  { %v512_v43 = vadd.f32 %v486_v42, %v365_v17 }
 0x10b   :  { %898 = vset.pattern.permute.xlu1 %v1142_v19  ;;  %562 = vperm.xlu2 %902, %v1139_v18  }
 0x113   :  { %471 = vperm.xlu1 %898, %v1102_v60   ;;  %904 = vset.pattern.permute.xlu2 %v1089_v53  ;;  %v1266_v60 = vpop.permute.xlu0 %459 }
 0x115   :  { %v418_v50 = vpop.permute.xlu2 %417  ;;  %v1264_v53 = vpop.permute.xlu1 %320 }
 0x116   :  { %v489_v36 = vmul.f32 %v418_v50, %v1222_v2  ;;  %v502_v54 = vmul.f32 %v418_v50, %v1214_v31  ;;  %v382_v50 = vmul.f32 %v1169_v48, %v1209_v22 }
 0x118   :  { %v1258_v1 = vadd.f32 %v489_v36, %v368_v51  ;;  %v1260_v19 = vadd.f32 %v502_v54, %v381_v55 }
 0x11b   :  { %900 = vset.pattern.permute.xlu1 %v1059_v62  ;;  %574 = vperm.xlu2 %904, %v1139_v18   ;;  %v509_v62 = vmul.f32 %v1266_v60, %v1214_v31  ;;  %v557_v12 = vpop.permute.xlu0 %556 }
 0x123   :  { %550 = vperm.xlu1 %900, %v1139_v18   ;;  %907 = vset.pattern.permute.xlu2 %v1086_v52 }
 0x125   :  { %v1274_v58 = vpop.permute.xlu1 %338  ;;  %v436_v59 = vpop.permute.xlu2 %435 }
 0x126   :  { %v388_v61 = vmul.f32 %v1274_v58, %v1209_v22  ;;  %v492_v63 = vmul.f32 %v436_v59, %v1222_v2  ;;  %v505_v3 = vmul.f32 %v436_v59, %v1214_v31 }
 0x128   :  { %v1282_v52 = vadd.f32 %v509_v62, %v388_v61  ;;  %v1284_v8 = vadd.f32 %v492_v63, %v371_v57  ;;  %v1286_v10 = vadd.f32 %v505_v3, %v384_v26  ;;  %v385_v61 = vmul.f32 %v1264_v53, %v1209_v22  ;;  %v587_v3 = vpop.permute.xlu0 %586 }
 0x12b   :  { %903 = vset.pattern.permute.xlu1 %v1074_v35  ;;  %592 = vperm.xlu2 %907, %v1139_v18  }
 0x133   :  { %568 = vperm.xlu1 %903, %v1139_v18   ;;  %909 = vset.pattern.permute.xlu2 %v1115_v5 }
 0x135   :  { %v448_v37 = vpop.permute.xlu2 %447  ;;  %v1304_v5 = vpop.permute.xlu1 %350 }
 0x136   :  { %v494_v14 = vmul.f32 %v448_v37, %v1222_v2  ;;  %v507_v15 = vmul.f32 %v448_v37, %v1214_v31 }
 0x138   :  { %v1298_v16 = vadd.f32 %v494_v14, %v373_v11  ;;  %v1300_v35 = vadd.f32 %v507_v15, %v386_v9  ;;  %v491_v11 = vmul.f32 %v1224_v34, %v1222_v2 }
 0x13b   :  { %905 = vset.pattern.permute.xlu1 %v1097_v56  ;;  %604 = vperm.xlu2 %909, %v1139_v18  }
 0x143   :  { %580 = vperm.xlu1 %905, %v1139_v18   ;;  %912 = vset.pattern.permute.xlu2 %v980_v20 }
 0x145   :  { %v412_v24 = vpop.permute.xlu1 %411  ;;  %v466_v25 = vpop.permute.xlu2 %465 }
 0x146   :  { %v501_v56 = vmul.f32 %v412_v24, %v1214_v31  ;;  %v497_v32 = vmul.f32 %v466_v25, %v1222_v2  ;;  %v510_v33 = vmul.f32 %v466_v25, %v1214_v31  ;;  %v488_v54 = vmul.f32 %v412_v24, %v1222_v2 }
 0x148   :  { %v527_v30 = vadd.f32 %v501_v56, %v380_v44  ;;  %v1316_v39 = vadd.f32 %v497_v32, %v376_v21  ;;  %v1318_v40 = vadd.f32 %v510_v33, %v389_v28  ;;  %v514_v26 = vadd.f32 %v488_v54, %v367_v13 }
 0x149   :  { %v372_v21 = vmul.f32 %v1264_v53, %v1226_v6  ;;  %v375_v56 = vmul.f32 %v1274_v58, %v1226_v6  ;;  %v496_v32 = vmul.f32 %v1266_v60, %v1222_v2  ;;  %v369_v60 = vmul.f32 %v1169_v48, %v1226_v6 }
 0x14a   :  { %v1320_v41 = vadd.f32 %v557_v12, %v527_v30  ;;  %v633_v59 = vadd.f32 %v557_v12, %v514_v26 }
 0x14b   :  { %908 = vset.pattern.permute.xlu1 %v1110_v4 }
 0x153   :  { %598 = vperm.xlu1 %908, %v1139_v18  }
 0x155   :  { %v424_v51 = vpop.permute.xlu1 %423  ;;  %v545_v36 = vpop.permute.xlu2 %544 }
 0x156   :  { %v503_v55 = vmul.f32 %v424_v51, %v1214_v31  ;;  %v631_v57 = vadd.f32 %v545_v36, %v512_v43  ;;  %v644_v4 = vadd.f32 %v545_v36, %v1230_v38  ;;  %v490_v43 = vmul.f32 %v424_v51, %v1222_v2 }
 0x158   :  { %684 = vperm.xlu2 %912, %v631_v57   ;;  %v529_v23 = vadd.f32 %v503_v55, %v382_v50  ;;  %v516_v58 = vadd.f32 %v490_v43, %v369_v60  ;;  %v387_v57 = vmul.f32 %v1185_v46, %v1209_v22 }
 0x15b   :  { %910 = vset.pattern.permute.xlu1 %v1120_v7  ;;  %v370_v7 = vmul.f32 %v1228_v27, %v1226_v6 }
 0x15d   :  { %v517_v9 = vadd.f32 %v491_v11, %v370_v7 }
 0x160   :  { %690 = vperm.xlu2 %912, %v633_v59   ;;  %v377_v59 = vmul.f32 %v1304_v5, %v1226_v6 }
 0x163   :  { %610 = vperm.xlu1 %910, %v1139_v18  }
 0x165   :  { %v442_v62 = vpop.permute.xlu1 %441  ;;  %v563_v29 = vpop.permute.xlu2 %562 }
 0x166   :  { %v506_v63 = vmul.f32 %v442_v62, %v1214_v31  ;;  %v493_v14 = vmul.f32 %v442_v62, %v1222_v2  ;;  %v390_v62 = vmul.f32 %v1304_v5, %v1209_v22 }
 0x168   :  { %v532_v38 = vadd.f32 %v506_v63, %v385_v61 }
 0x16a   :  { %v1340_v37 = vadd.f32 %v587_v3, %v532_v38 }
 0x16b   :  { %913 = vset.pattern.permute.xlu1 %v980_v20  ;;  %v519_v20 = vadd.f32 %v493_v14, %v372_v21 }
 0x16d   :  { %v638_v24 = vadd.f32 %v587_v3, %v519_v20  ;;  %v1398_v20 = vand.u32 127, %v274_v0 }
 0x175   :  { %v575_v18 = vpop.permute.xlu2 %574  ;;  %v454_v25 = vpop.permute.xlu1 %453 }
 0x176   :  { %v636_v15 = vadd.f32 %v575_v18, %v517_v9  ;;  %v1348_v44 = vadd.f32 %v575_v18, %v1242_v45  ;;  %v522_v45 = vadd.f32 %v496_v32, %v375_v56  ;;  %v495_v55 = vmul.f32 %v454_v25, %v1222_v2 }
 0x177   :  { %v508_v48 = vmul.f32 %v454_v25, %v1214_v31  ;;  %v764_v25 = vadd.s32 4294967288, %v1398_v20  ;;  %v768_v56 = vadd.s32 4294967280, %v1398_v20 }
 0x178   :  { %699 = vperm.xlu2 %912, %v636_v15  }
 0x179   :  { %v534_v13 = vadd.f32 %v508_v48, %v387_v57 }
 0x180   :  { %705 = vperm.xlu2 %912, %v638_v24  }
 0x185   :  { %v593_v34 = vpop.permute.xlu2 %592  ;;  %v472_v27 = vpop.permute.xlu1 %471 }
 0x186   :  { %v652_v28 = vadd.f32 %v593_v34, %v1300_v35  ;;  %v634_v35 = vadd.f32 %v563_v29, %v1258_v1  ;;  %v639_v51 = vadd.f32 %v593_v34, %v1298_v16 }
 0x195   :  { %v551_v33 = vpop.permute.xlu1 %550  ;;  %v605_v12 = vpop.permute.xlu2 %604 }
 0x196   :  { %v632_v53 = vadd.f32 %v551_v33, %v1244_v47  ;;  %v645_v30 = vadd.f32 %v551_v33, %v1246_v49  ;;  %v641_v42 = vadd.f32 %v605_v12, %v522_v45  ;;  %v654_v17 = vadd.f32 %v605_v12, %v1282_v52 }
 0x197   :  { %v647_v47 = vadd.f32 %v563_v29, %v1260_v19  ;;  %v374_v19 = vmul.f32 %v1185_v46, %v1226_v6  ;;  %v617_v46 = vpop.permute.xlu0 %616  ;;  %v776_v33 = vadd.s32 4294967264, %v1398_v20 }
 0x198   :  { %687 = vperm.xlu1 %913, %v632_v53   ;;  %714 = vperm.xlu2 %912, %v641_v42   ;;  %v772_v53 = vadd.s32 4294967272, %v1398_v20 }
 0x1a0   :  { %693 = vperm.xlu1 %913, %v634_v35   ;;  %723 = vperm.xlu2 %912, %v644_v4   ;;  %v521_v4 = vadd.f32 %v495_v55, %v374_v19  ;;  %v792_v19 = vadd.s32 4294967232, %v1398_v20 }
 0x1a5   :  { %v569_v50 = vpop.permute.xlu1 %568 }
 0x1a6   :  { %v635_v36 = vadd.f32 %v569_v50, %v516_v58  ;;  %v648_v49 = vadd.f32 %v569_v50, %v529_v23  ;;  %v511_v23 = vmul.f32 %v472_v27, %v1214_v31 }
 0x1a8   :  { %696 = vperm.xlu0 %914, %v635_v36   ;;  %732 = vperm.xlu2 %912, %v647_v47   ;;  %v537_v63 = vadd.f32 %v511_v23, %v390_v62  ;;  %v780_v36 = vadd.s32 4294967256, %v1398_v20 }
 0x1aa   :  { %v656_v38 = vadd.f32 %v617_v46, %v537_v63 }
 0x1b2   :  { %v685_v6 = vpop.permute.xlu2 %684 }
 0x1b3   :  { %v763_v12 = vperm.slane %v685_v6, %v1398_v20 }
 0x1b5   :  { %v581_v52 = vpop.permute.xlu1 %580 }
 0x1b6   :  { %v637_v54 = vadd.f32 %v581_v52, %v1284_v8  ;;  %v650_v1 = vadd.f32 %v581_v52, %v1286_v10  ;;  %v498_v10 = vmul.f32 %v472_v27, %v1222_v2 }
 0x1b8   :  { %702 = vperm.xlu1 %913, %v637_v54   ;;  %741 = vperm.xlu2 %912, %v650_v1   ;;  %v524_v61 = vadd.f32 %v498_v10, %v377_v59  ;;  %v784_v54 = vadd.s32 4294967248, %v1398_v20 }
 0x1ba   :  { %v643_v3 = vadd.f32 %v617_v46, %v524_v61  ;;  %v691_v5 = vpop.permute.xlu2 %690 }
 0x1c0   :  { %708 = vperm.xlu1 %913, %v639_v51  }
 0x1c5   :  { %v599_v8 = vpop.permute.xlu1 %598 }
 0x1c6   :  { %v640_v26 = vadd.f32 %v599_v8, %v521_v4  ;;  %v653_v16 = vadd.f32 %v599_v8, %v534_v13  ;;  %v788_v8 = vadd.s32 4294967240, %v1398_v20 }
 0x1c8   :  { %711 = vperm.xlu0 %914, %v640_v26   ;;  %750 = vperm.xlu2 %912, %v653_v16   ;;  %v796_v26 = vadd.s32 4294967224, %v1398_v20 }
 0x1d0   :  { %759 = vperm.xlu2 %912, %v656_v38   ;;  %720 = vperm.xlu0 %914, %v643_v3  }
 0x1d2   :  { %v700_v11 = vpop.permute.xlu2 %699 }
 0x1d3   :  { %v781_v13 = vperm.slane %v700_v11, %v780_v36 }
 0x1d5   :  { %v611_v2 = vpop.permute.xlu1 %610 }
 0x1d6   :  { %v642_v31 = vadd.f32 %v611_v2, %v1316_v39  ;;  %v655_v22 = vadd.f32 %v611_v2, %v1318_v40 }
 0x1d8   :  { %717 = vperm.xlu1 %913, %v642_v31   ;;  %729 = vperm.xlu0 %914, %v1320_v41   ;;  %v804_v31 = vadd.s32 4294967208, %v1398_v20 }
 0x1da   :  { %v1385_v9 = vpop.permute.xlu2 %705 }
 0x1db   :  { %v789_v38 = vperm.slane %v1385_v9, %v788_v8 }
 0x1e0   :  { %726 = vperm.xlu1 %913, %v645_v30   ;;  %738 = vperm.xlu0 %914, %v1348_v44  }
 0x1e8   :  { %735 = vperm.xlu1 %913, %v648_v49   ;;  %747 = vperm.xlu0 %914, %v652_v28  }
 0x1f0   :  { %744 = vperm.xlu1 %913, %v1340_v37   ;;  %756 = vperm.xlu0 %914, %v655_v22   ;;  %v800_v22 = vadd.s32 4294967216, %v1398_v20 }
 0x1f2   :  { %v1389_v14 = vpop.permute.xlu2 %714 }
 0x1f8   :  { %753 = vperm.xlu1 %913, %v654_v17   ;;  %v769_v17 = vperm.slane %v691_v5, %v768_v56 }
 0x1fa   :  { %v724_v37 = vpop.permute.xlu2 %723 }
 0x1fb   :  { %v812_v32 = vperm.slane %v724_v37, %v1398_v20 }
 0x202   :  { %v733_v24 = vpop.permute.xlu2 %732 }
 0x203   :  { %v817_v49 = vperm.slane %v733_v24, %v772_v53 }
 0x20a   :  { %v688_v29 = vpop.permute.xlu1 %687 }
 0x20b   :  { %v765_v45 = vperm.slane %v688_v29, %v764_v25 }
 0x20d   :  { %v767_v35 = vsel %vm766_vm2, %v765_v45, %v763_v12 }
 0x20e   :  { %v771_v52 = vsel %vm770_vm3, %v769_v17, %v767_v35 }
 0x212   :  { %v694_v7 = vpop.permute.xlu1 %693  ;;  %v742_v0 = vpop.permute.xlu2 %741 }
 0x213   :  { %v773_v43 = vperm.slane %v694_v7, %v772_v53  ;;  %v823_v61 = vperm.slane %v742_v0, %v784_v54 }
 0x215   :  { %v775_v1 = vsel %vm774_vm4, %v773_v43, %v771_v52 }
 0x21a   :  { %v697_v39 = vpop.permute.xlu0 %696 }
 0x21b   :  { %v777_v58 = vperm.slane %v697_v39, %v776_v33 }
 0x21d   :  { %v779_v55 = vsel %vm778_vm5, %v777_v58, %v775_v1 }
 0x21e   :  { %v783_v16 = vsel %vm782_vm6, %v781_v13, %v779_v55 }
 0x222   :  { %v751_v10 = vpop.permute.xlu2 %750 }
 0x22a   :  { %v703_v41 = vpop.permute.xlu1 %702  ;;  %v760_v24 = vpop.permute.xlu2 %759 }
 0x22b   :  { %v785_v48 = vperm.slane %v703_v41, %v784_v54  ;;  %v801_v41 = vperm.slane %v1389_v14, %v800_v22 }
 0x22d   :  { %v787_v63 = vsel %vm786_vm7, %v785_v48, %v783_v16 }
 0x22e   :  { %v791_v5 = vsel %vm790_vm8, %v789_v38, %v787_v63 }
 0x232   :  { %v1391_v15 = vpop.permute.xlu1 %708 }
 0x233   :  { %v793_v46 = vperm.slane %v1391_v15, %v792_v19 }
 0x235   :  { %v795_v11 = vsel %vm794_vm9, %v793_v46, %v791_v5 }
 0x23a   :  { %v1387_v18 = vpop.permute.xlu0 %711 }
 0x23b   :  { %v797_v2 = vperm.slane %v1387_v18, %v796_v26  ;;  %v808_v18 = vadd.s32 4294967200, %v1398_v20 }
 0x23d   :  { %v799_v39 = vsel %vm798_vm10, %v797_v2, %v795_v11  ;;  %v835_v14 = vperm.slane %v760_v24, %v808_v18 }
 0x242   :  { %v1393_v40 = vpop.permute.xlu0 %720 }
 0x24a   :  { %v1395_v44 = vpop.permute.xlu1 %717  ;;  %v730_v21 = vpop.permute.xlu0 %729 }
 0x24b   :  { %v815_v42 = vperm.slane %v730_v21, %v768_v56  ;;  %v805_v9 = vperm.slane %v1395_v44, %v804_v31  ;;  %v829_v21 = vperm.slane %v751_v10, %v796_v26  ;;  %v809_v44 = vperm.slane %v1393_v40, %v808_v18 }
 0x252   :  { %v727_v34 = vpop.permute.xlu1 %726  ;;  %v739_v27 = vpop.permute.xlu0 %738 }
 0x253   :  { %v813_v28 = vperm.slane %v727_v34, %v764_v25  ;;  %v821_v23 = vperm.slane %v739_v27, %v780_v36  ;;  %v803_v34 = vsel %vm802_vm11, %v801_v41, %v799_v39 }
 0x254   :  { %v807_v27 = vsel %vm806_vm12, %v805_v9, %v803_v34 }
 0x255   :  { %v814_v30 = vsel %vm766_vm2, %v813_v28, %v812_v32 }
 0x256   :  { %v816_v50 = vsel %vm770_vm3, %v815_v42, %v814_v30 }
 0x257   :  { %v818_v51 = vsel %vm774_vm4, %v817_v49, %v816_v50 }
 0x25a   :  { %v736_v60 = vpop.permute.xlu1 %735  ;;  %v748_v4 = vpop.permute.xlu0 %747 }
 0x25b   :  { %v819_v47 = vperm.slane %v736_v60, %v776_v33  ;;  %v827_v7 = vperm.slane %v748_v4, %v792_v19  ;;  %v811_v33 = vsel %vm810_vm13, %v809_v44, %v807_v27 }
 0x25d   :  { %v820_v57 = vsel %vm778_vm5, %v819_v47, %v818_v51 }
 0x25e   :  { %v822_v59 = vsel %vm782_vm6, %v821_v23, %v820_v57 }
 0x25f   :  { %v824_v6 = vsel %vm786_vm7, %v823_v61, %v822_v59 }
 0x262   :  { %v745_v62 = vpop.permute.xlu1 %744  ;;  %v757_v37 = vpop.permute.xlu0 %756 }
 0x263   :  { %v825_v3 = vperm.slane %v745_v62, %v788_v8  ;;  %v833_v56 = vperm.slane %v757_v37, %v804_v31 }
 0x265   :  { %v826_v29 = vsel %vm790_vm8, %v825_v3, %v824_v6 }
 0x266   :  { %v828_v15 = vsel %vm794_vm9, %v827_v7, %v826_v29 }
 0x267   :  { %v830_v32 = vsel %vm798_vm10, %v829_v21, %v828_v15 }
 0x26a   :  { %v754_v25 = vpop.permute.xlu1 %753 }
 0x26b   :  { %v831_v28 = vperm.slane %v754_v25, %v800_v22 }
 0x26d   :  { %v832_v20 = vsel %vm802_vm11, %v831_v28, %v830_v32 }
 0x26e   :  { %v834_v45 = vsel %vm806_vm12, %v833_v56, %v832_v20 }
 0x26f   :  { %v836_v12 = vsel %vm810_vm13, %v835_v14, %v834_v45 }
 0x270   :  { %v838_v53 = vsel %vm837_vm14, %v836_v12, %v811_v33 }
 0x271   :  { %841 = vst.msk [vmem:[#allocation5] sm:$0x3] %vm840_vm15, %v838_v53 }
 0x272   :  { %852 = dma.vmem_to_hbm [thread:$0]  %s848_s10, 32, %s850_s13, [#allocation3]  }
 0x273   :  { %977 = dma.done.wait [#allocation3], 32  }
 0x274   :  { %978 = vsyncadd [#allocation3], 4294967264 }
 0x275   :  { %857 = vsyncpa [#allocation3], 1 }
 0x276   :  { %858 = vsyncpa [#allocation4], 1 }

</bundles_post_ra>
